<compile_context>
chip_gen: v7x
topology: tpu7x:2x2x1
jax: 0.10.0
libtpu: 0.0.40
codegen_flags: <defaults>
</compile_context>

<pallas_src>
import functools
from typing import List, NamedTuple, Tuple

import jax
import jax.numpy as jnp
from jax.experimental import pallas as pl
from jax.experimental.pallas import tpu as pltpu


class DenseGraph(NamedTuple):
    node_features: jax.Array     # (N, D)
    adjacency_matrix: jax.Array  # (N, N)

    @property
    def num_nodes(self) -> int:
        return self.node_features.shape[0]


# --------------------------------------------------------------------------
# Pallas kernels: pure broadcast-multiplies (HBM-bandwidth bound).
# --------------------------------------------------------------------------
def _mask_feat_adj_kernel(feat_ref, adj_ref, mcol_ref, mrow_ref,
                          feat_out_ref, adj_out_ref):
    # feat (1,TM,D), adj (1,TM,N), mcol (1,TM,1) f32, mrow (1,1,N) f32.
    mcol = mcol_ref[...]
    mrow = mrow_ref[...]
    feat_out_ref[...] = feat_ref[...] * mcol.astype(feat_out_ref.dtype)
    adt = adj_out_ref.dtype
    # Form the (TM,N) outer product directly in the adjacency dtype.
    adj_out_ref[...] = adj_ref[...] * mcol.astype(adt) * mrow.astype(adt)


def _mask_adj_kernel(adj_ref, mcol_ref, mrow_ref, adj_out_ref):
    adt = adj_out_ref.dtype
    adj_out_ref[...] = (adj_ref[...]
                        * mcol_ref[...].astype(adt)
                        * mrow_ref[...].astype(adt))


# --------------------------------------------------------------------------
# Tiling helpers (generation-aware).
# --------------------------------------------------------------------------
def _vmem_capacity_bytes() -> int:
    try:
        return int(pltpu.get_tpu_info().vmem_capacity_bytes)
    except Exception:
        return 64 * 1024 * 1024  # conservative: v7x per-TensorCore VMEM


def _pick_row_tile(n: int, fused_d: int, feat_itemsize: int,
                   adj_itemsize: int, budget: int) -> Tuple[int, int]:
    """Largest row tile (multiple of 8, or full N) whose double-buffered
    in+out working set stays under `budget`.  Returns (tile, working_set)."""
    # Per-row bytes, double-buffered (x2), in + out (x2) for adj (and feat if fused).
    per_row = 2 * 2 * n * adj_itemsize
    if fused_d:
        per_row += 2 * 2 * fused_d * feat_itemsize
    per_row += 2 * 128 * 4                      # (TM,1) f32 mask col, lane-padded, dbl-buffered
    fixed = 2 * n * 4                           # (1,N) f32 mask row, dbl-buffered (counted once)
    tm = (budget - fixed) // max(per_row, 1)
    if tm >= n:
        tm = n
    else:
        tm = max(8, (tm // 8) * 8)
    working_set = tm * per_row + fixed
    return tm, working_set


# --------------------------------------------------------------------------
# pallas_call wrapper.
# --------------------------------------------------------------------------
def _node_drop_pallas(feat, adj, mask):
    """feat: (B,N,D), adj: (B,N,N), mask: (B,N) f32 with 0/1 entries."""
    b, n, d = feat.shape
    fuse_features = (d >= 128) and (d % 128 == 0)  # lane-dense feature output

    vmem_cap = _vmem_capacity_bytes()
    budget = (48 * 1024 * 1024) if vmem_cap >= 100 * 1024 * 1024 else (24 * 1024 * 1024)
    tm, working_set = _pick_row_tile(
        n, d if fuse_features else 0,
        feat.dtype.itemsize, adj.dtype.itemsize, budget)

    # Right-size the VMEM limit: actual working set + slack, never the full
    # physical VMEM (leave headroom for Mosaic internal scratch on v7x).
    needed = working_set + (2 << 20)
    cap = max(32 << 20, vmem_cap - (16 << 20))
    vmem_limit = min(max(needed, 32 << 20), cap)
    if needed > cap:  # oversized-N fallback; let the compiler check it.
        vmem_limit = needed

    row_tiles = pl.cdiv(n, tm)
    mcol = mask[:, :, None]   # (B, N, 1) f32
    mrow = mask[:, None, :]   # (B, 1, N) f32

    # Put the grid axis with the most blocks first so megacore sharding on
    # v7x splits the HBM-bound work across both TensorCores even when B==1.
    if row_tiles >= b:
        grid = (row_tiles, b)
        block_map = lambda ri, bi: (bi, ri, 0)
        mrow_map = lambda ri, bi: (bi, 0, 0)
    else:
        grid = (b, row_tiles)
        block_map = lambda bi, ri: (bi, ri, 0)
        mrow_map = lambda bi, ri: (bi, 0, 0)

    cparams = pltpu.CompilerParams(
        dimension_semantics=("parallel", "parallel"),
        vmem_limit_bytes=int(vmem_limit),
    )

    adj_spec = pl.BlockSpec((1, tm, n), block_map)
    mcol_spec = pl.BlockSpec((1, tm, 1), block_map)
    mrow_spec = pl.BlockSpec((1, 1, n), mrow_map)

    if fuse_features:
        feat_spec = pl.BlockSpec((1, tm, d), block_map)
        feat_out, adj_out = pl.pallas_call(
            _mask_feat_adj_kernel,
            out_shape=(
                jax.ShapeDtypeStruct(feat.shape, feat.dtype),
                jax.ShapeDtypeStruct(adj.shape, adj.dtype),
            ),
            grid=grid,
            in_specs=[feat_spec, adj_spec, mcol_spec, mrow_spec],
            out_specs=(feat_spec, adj_spec),
            # feat/adj are jit-internal intermediates -> aliasing is truly free.
            input_output_aliases={0: 0, 1: 1},
            compiler_params=cparams,
        )(feat, adj, mcol, mrow)
    else:
        # Sub-128-lane feature output would force masked partial stores;
        # let XLA handle the (cheap) feature multiply inside the same jit.
        feat_out = feat * mcol.astype(feat.dtype)
        adj_out = pl.pallas_call(
            _mask_adj_kernel,
            out_shape=jax.ShapeDtypeStruct(adj.shape, adj.dtype),
            grid=grid,
            in_specs=[adj_spec, mcol_spec, mrow_spec],
            out_specs=adj_spec,
            input_output_aliases={0: 0},
            compiler_params=cparams,
        )(adj, mcol, mrow)
    return feat_out, adj_out


# --------------------------------------------------------------------------
# Batched node-drop: all data movement (stack, mask build, kernel, unstack)
# lives inside ONE jitted call per shape-bucket.
# --------------------------------------------------------------------------
@functools.partial(jax.jit, static_argnames=("num_drop",))
def _node_drop_batched(feats, adjs, key, graph_ids, *, num_drop):
    """feats/adjs: tuples of per-graph (N,D)/(N,N) arrays of identical shape.
    graph_ids: (B,) uint32 so each graph's randomness is independent of how
    graphs were bucketed/batched."""
    feat = jnp.stack(feats)        # (B, N, D) -- jit-internal intermediate
    adj = jnp.stack(adjs)          # (B, N, N) -- jit-internal intermediate
    b, n, _ = feat.shape

    keys = jax.vmap(lambda i: jax.random.fold_in(key, i))(graph_ids)
    perms = jax.vmap(lambda k: jax.random.permutation(k, n))(keys)   # (B, N)
    mask = jnp.ones((b, n), jnp.float32)
    if num_drop > 0:
        drop_idx = perms[:, :num_drop]                               # (B, num_drop)
        mask = mask.at[jnp.arange(b)[:, None], drop_idx].set(0.0)

    feat_out, adj_out = _node_drop_pallas(feat, adj, mask)
    # Unstack inside the jit so the whole bucket is one dispatch.
    return (tuple(feat_out[i] for i in range(b)),
            tuple(adj_out[i] for i in range(b)))


@functools.partial(jax.jit, static_argnames=("num_drop",))
def augment_batch(feat, adj, key, graph_ids, *, num_drop):
    """Zero-copy batched API: feat (B,N,D), adj (B,N,N) in, batched arrays out."""
    b, n, _ = feat.shape
    keys = jax.vmap(lambda i: jax.random.fold_in(key, i))(graph_ids)
    perms = jax.vmap(lambda k: jax.random.permutation(k, n))(keys)
    mask = jnp.ones((b, n), jnp.float32)
    if num_drop > 0:
        drop_idx = perms[:, :num_drop]
        mask = mask.at[jnp.arange(b)[:, None], drop_idx].set(0.0)
    return _node_drop_pallas(feat, adj, mask)


class NodeDropper:
    """JAX/Pallas port of the PyTorch NodeDropper module."""

    def __init__(self, drop_frac: float = 0.25):
        self.drop_frac = drop_frac

    def __call__(self, graphs: List[DenseGraph], key: jax.Array) -> List[DenseGraph]:
        # Bucket graphs by shape/dtype so each bucket is ONE batched jitted call.
        buckets = {}
        for idx, g in enumerate(graphs):
            sig = (g.node_features.shape, str(g.node_features.dtype),
                   g.adjacency_matrix.shape, str(g.adjacency_matrix.dtype))
            buckets.setdefault(sig, []).append(idx)

        out: List[DenseGraph] = [None] * len(graphs)  # type: ignore[list-item]
        for sig, idxs in buckets.items():
            feats = tuple(graphs[i].node_features for i in idxs)
            adjs = tuple(graphs[i].adjacency_matrix for i in idxs)
            n = sig[0][0]
            num_drop = int(n * self.drop_frac)
            graph_ids = jnp.asarray(idxs, dtype=jnp.uint32)
            feats_out, adjs_out = _node_drop_batched(
                feats, adjs, key, graph_ids, num_drop=num_drop)
            for j, i in enumerate(idxs):
                out[i] = DenseGraph(feats_out[j], adjs_out[j])
        return out


if __name__ == "__main__":
    key = jax.random.PRNGKey(0)

    # Two shape buckets, two graphs each:
    #   bucket A: N=16, D=32  -> adjacency-only Pallas path (features via XLA)
    #   bucket B: N=24, D=128 -> fused feature+adjacency Pallas path
    shapes = [(16, 32), (16, 32), (24, 128), (24, 128)]
    graphs = []
    for i, (N, D) in enumerate(shapes):
        k_feat, k_adj = jax.random.split(jax.random.fold_in(key, 100 + i))
        feats = jax.random.normal(k_feat, (N, D), dtype=jnp.float32)
        adj = (jax.random.uniform(k_adj, (N, N)) > 0.5).astype(jnp.float32)
        adj = jnp.maximum(adj, adj.T)  # symmetric adjacency
        graphs.append(DenseGraph(feats, adj))

    dropper = NodeDropper(drop_frac=0.25)
    aug_key = jax.random.fold_in(key, 7)
    augments = dropper(graphs, aug_key)

    # Block on results and check against a pure-JAX reference.
    for i, (g_in, g_out) in enumerate(zip(graphs, augments)):
        jax.block_until_ready(g_out.node_features)
        jax.block_until_ready(g_out.adjacency_matrix)

        sub_key = jax.random.fold_in(aug_key, i)
        perm = jax.random.permutation(sub_key, g_in.num_nodes)
        nodes_to_drop = perm[: int(g_in.num_nodes * 0.25)]
        mask = jnp.ones((g_in.num_nodes,), jnp.float32).at[nodes_to_drop].set(0.0)
        ref_feat = g_in.node_features * mask[:, None]
        ref_adj = g_in.adjacency_matrix * mask[:, None] * mask[None, :]

        assert jnp.allclose(g_out.node_features, ref_feat), f"feature mismatch on graph {i}"
        assert jnp.allclose(g_out.adjacency_matrix, ref_adj), f"adjacency mismatch on graph {i}"

    print("KERNEL_OK")
</pallas_src>

<mosaic_0001>
module attributes {stable_mosaic.version = 11 : i64} {
  func.func @_mask_adj_kernel(%arg0: i32, %arg1: i32, %arg2: memref<1x16x16xf32, #tpu.memory_space<vmem>>, %arg3: memref<1x16x1xf32, #tpu.memory_space<vmem>>, %arg4: memref<1x1x16xf32, #tpu.memory_space<vmem>>, %arg5: memref<1x16x16xf32, #tpu.memory_space<vmem>>) attributes {dimension_semantics = [#tpu.dimension_semantics<parallel>, #tpu.dimension_semantics<parallel>], iteration_bounds = array<i64: 2, 1>, scalar_prefetch = 0 : i64, scratch_operands = 0 : i64, tpu.core_type = #tpu.core_type<tc>, window_params = [{transform_indices = @transform_0, window_bounds = array<i64: 1, 16, 16>}, {transform_indices = @transform_1, window_bounds = array<i64: 1, 16, 1>}, {transform_indices = @transform_2, window_bounds = array<i64: 1, 1, 16>}, {transform_indices = @transform_3, window_bounds = array<i64: 1, 16, 16>}]} {
    %c0 = arith.constant 0 : index
    %c0_0 = arith.constant 0 : index
    %c0_1 = arith.constant 0 : index
    %0 = vector.load %arg2[%c0, %c0_0, %c0_1] : memref<1x16x16xf32, #tpu.memory_space<vmem>>, vector<1x16x16xf32>
    %c0_2 = arith.constant 0 : index
    %c0_3 = arith.constant 0 : index
    %c0_4 = arith.constant 0 : index
    %1 = vector.load %arg3[%c0_2, %c0_3, %c0_4] : memref<1x16x1xf32, #tpu.memory_space<vmem>>, vector<1x16x1xf32>
    %2 = vector.broadcast %1 : vector<1x16x1xf32> to vector<1x16x16xf32>
    %3 = arith.mulf %0, %2 : vector<1x16x16xf32>
    %c0_5 = arith.constant 0 : index
    %c0_6 = arith.constant 0 : index
    %c0_7 = arith.constant 0 : index
    %4 = vector.load %arg4[%c0_5, %c0_6, %c0_7] : memref<1x1x16xf32, #tpu.memory_space<vmem>>, vector<1x1x16xf32>
    %5 = vector.broadcast %4 : vector<1x1x16xf32> to vector<1x16x16xf32>
    %6 = arith.mulf %3, %5 : vector<1x16x16xf32>
    %c0_8 = arith.constant 0 : index
    %c0_9 = arith.constant 0 : index
    %c0_10 = arith.constant 0 : index
    %7 = vector.load %arg5[%c0_8, %c0_9, %c0_10] : memref<1x16x16xf32, #tpu.memory_space<vmem>>, vector<1x16x16xf32>
    tpu.vector_store %arg5[%c0_8, %c0_9, %c0_10], %6 {strides = array<i32>} : memref<1x16x16xf32, #tpu.memory_space<vmem>>, vector<1x16x16xf32>,
    return
  }
  func.func @transform_0(%arg0: i32, %arg1: i32) -> (i32, i32, i32) {
    %c0_i32 = arith.constant 0 : i32
    %c0_i32_0 = arith.constant 0 : i32
    return %arg0, %arg1, %c0_i32 : i32, i32, i32
  }
  func.func @transform_1(%arg0: i32, %arg1: i32) -> (i32, i32, i32) {
    %c0_i32 = arith.constant 0 : i32
    %c0_i32_0 = arith.constant 0 : i32
    return %arg0, %arg1, %c0_i32 : i32, i32, i32
  }
  func.func @transform_2(%arg0: i32, %arg1: i32) -> (i32, i32, i32) {
    %c0_i32 = arith.constant 0 : i32
    %c0_i32_0 = arith.constant 0 : i32
    %c0_i32_1 = arith.constant 0 : i32
    return %arg0, %c0_i32, %c0_i32_0 : i32, i32, i32
  }
  func.func @transform_3(%arg0: i32, %arg1: i32) -> (i32, i32, i32) {
    %c0_i32 = arith.constant 0 : i32
    %c0_i32_0 = arith.constant 0 : i32
    return %arg0, %arg1, %c0_i32 : i32, i32, i32
  }
}

</mosaic_0001>

<bundles_post_ra>
// kernel: _node_drop_batched.1
= control target key start
LH: loop header
LB: loop body
LE: loop exit
PB: predicated region body
PF: predicated region fallthrough
CT: control target
= control target key end

     0   :  { %s490_s12 = smov 0   ;;  %s492_s13 = smov 0   ;;  %s529_s0 = inlined_call_operand.vmem [shape: f32[2,16,16], index: 0, kind: input, shape index: {}, may-alias: {0,3}]   ;;  %s530_s1 = inlined_call_operand.vmem [shape: f32[2,16,1], index: 1, kind: input, shape index: {}]   ;;  %s531_s2 = inlined_call_operand.vmem [shape: f32[2,1,16], index: 2, kind: input, shape index: {}]   ;;  %s532_s3 = inlined_call_operand.vmem [shape: f32[2,16,16], index: 3, kind: output, shape index: {}, may-alias: {0,3}]  }
   0x1   :  { %s494_s14 = smov 0  }
   0x2 LB: > { %s25_s15 = sadd.s32 1, %s463_s13  ;;  %p406_p0 = scmp.ge.s32.totalorder %s467_s14, 1  ;;  %s467_s14 = sphi %s494_s14, %s13_s14   ;;  %s463_s13 = sphi %s492_s13, %s534_s13   ;;  %s459_s12 = sphi %s490_s12, %s533_s12  }
   0x3   : > { %p27_p1 = scmp.ge.s32.totalorder %s25_s15, 2  ;;  %p183_p2 = scmp.lt.s32.totalorder %s467_s14, 3 }
   0x5   : > { %s536_s15 = smov (%p27_p1, %s25_s15), 0  ;;  %p184_p3 = pnand %p406_p0, %p183_p2 }
   0x6   : > { %p228_p4 = scmp.lt.s32.totalorder (!%p184_p3), %s459_s12, 1  ;;  %v469_v0 = vmov (!%p184_p3), 0   ;;  %vm285_vm0 = vcmask (!%p184_p3), 130048  }
   0x7   : > { %187 = sbr.rel (%p184_p3) target bundleno = 155 (0x9b), region = 32  ;;  %444 = vset.pattern.permute.xlu0 (!%p184_p3), %v469_v0 }
   0xe   : > { %s538_s12 = smov (!%p228_p4, %s459_s12), 1 }
   0xf   : > { %s416_s16 = sshll.u32 %s538_s12, 4  ;;  %s249_s25 = scalar_lea.vmem %s531_s2, %s538_s12 }
  0x10   : > { %s245_s19 = scalar_lea.vmem %s530_s1, %s416_s16  ;;  %s235_s22 = scalar_lea.vmem %s529_s0, %s416_s16  ;;  %v413_v4 = vld [vmem:[%s249_s25] ss:$0 sm:$0xff] }
  0x11   : > { %v262_v1 = vld [vmem:[%s245_s19] sm:$0xff]  ;;  %v263_v2 = vld [vmem:[%s245_s19 + $0x8] sm:$0xff]  ;;  %s258_s28 = scalar_lea.vmem %s532_s3, %s416_s16 }
  0x12   : > { %266 = vperm.xlu0 %444, %v262_v1   ;;  %v260_v3 = vld [vmem:[%s235_s22] sm:$0xff]  ;;  %v261_v7 = vld [vmem:[%s235_s22 + $0x8] sm:$0xff] }
  0x16   : > { %271 = vperm.xlu0 %444, %v263_v2  }
  0x91   : > { %v267_v5 = vpop.permute.xlu0 %266 }
  0x92   : > { %v274_v6 = vmul.f32 %v267_v5, %v260_v3 }
  0x94   : > { %v283_v8 = vmul.f32 %v413_v4, %v274_v6 }
  0x95   : > { %v272_v9 = vpop.permute.xlu0 %271 }
  0x96   : > { %v275_v10 = vmul.f32 %v272_v9, %v261_v7  ;;  %286 = vst.msk [vmem:[%s258_s28] sm:$0xff] %vm285_vm0, %v283_v8 }
  0x98   : > { %v284_v11 = vmul.f32 %v413_v4, %v275_v10 }
  0x9a   : > { %287 = vst.msk [vmem:[%s258_s28 + $0x8] sm:$0xff] %vm285_vm0, %v284_v11 }
  0x9b PF: > { %s13_s14 = sadd.s32 1, %s467_s14   ;;  %s533_s12 = smov %s463_s13 }
  0x9c   : > { %p10_p5 = scmp.ge.s32.totalorder %s13_s14, 4   ;;  %s534_s13 = smov %s536_s15 }
  0x9e   :  { %12 = sbr.rel (!%p10_p5) target bundleno = 2 (0x2), region = 68 }

</bundles_post_ra>
